<compile_context>
chip_gen: v6e
topology: v6e:2x2x1
jax: 0.10.0
libtpu: 0.0.40
codegen_flags: <defaults>
</compile_context>

<pallas_src>
import functools

import jax
import jax.numpy as jnp
from jax.experimental import pallas as pl
from jax.experimental.pallas import tpu as pltpu

LEAKY_SLOPE = 0.02
BN_EPS = 1e-5
HALO = 2            # max "same" padding in the block: conv5 pad=2 >= conv3/maxpool pad=1
_MIB = 1024 * 1024


def _leaky(y):
    return jnp.where(y > 0, y, LEAKY_SLOPE * y)


# ------------------------------ shared per-tile branch math --------------------------

def _emit_branches(xw, valid, w134, w4, wk, t, o_ref, width):
    """Compute all four branches for one haloed window and store into the output block.

    xw:    (Cin, width + 2*HALO) bf16 haloed window of x.
    valid: (1,   width + 2*HALO) bool — True for in-sequence columns.
    w134:  (3*c4, Cin) bf16 fused 1x1 weights (branch 1 / 2a / 3a, BN folded).
    w4:    (c4, Cin)   bf16 branch-4 1x1 weights (BN folded).
    wk:    (8, c4, c4) bf16 packed conv3 taps (0..2) + conv5 taps (3..7) (BN folded).
    t:     (6, c4, 1)  f32 folded BN shifts [t1, t2a, t2b, t3a, t3b, t4].
    o_ref: (1, 4*c4, width) output block.
    """
    c4 = w4.shape[0]

    def central(h, off):          # h[:, off:off+width] for a static off in [0, 2*HALO]
        return h[:, off:off + width]

    # Branches 1 / 2a / 3a all consume x: one fused (3*c4, Cin) x (Cin, win) MXU matmul.
    y = jnp.dot(w134, xw, preferred_element_type=jnp.float32)      # (3*c4, win) f32

    b1 = _leaky(central(y[0:c4], HALO) + t[0])
    o_ref[0, 0:c4, :] = b1.astype(o_ref.dtype)

    h2 = _leaky(y[c4:2 * c4] + t[1])          # branch-2 stage 1 (input of conv3)
    h3 = _leaky(y[2 * c4:3 * c4] + t[3])      # branch-3 stage 1 (input of conv5)
    # The "same" zero-padding of the second convs applies to h2/h3 (not to x).
    h2 = jnp.where(valid, h2, 0.0).astype(jnp.bfloat16)
    h3 = jnp.where(valid, h3, 0.0).astype(jnp.bfloat16)

    def tap_conv(h, first_tap, ksize):
        pad = (ksize - 1) // 2
        acc = jnp.dot(wk[first_tap], central(h, HALO - pad),
                      preferred_element_type=jnp.float32)
        for kk in range(1, ksize):                                  # static unroll
            acc = acc + jnp.dot(wk[first_tap + kk], central(h, HALO + kk - pad),
                                preferred_element_type=jnp.float32)
        return acc

    b2 = _leaky(tap_conv(h2, 0, 3) + t[2])
    o_ref[0, c4:2 * c4, :] = b2.astype(o_ref.dtype)

    b3 = _leaky(tap_conv(h3, 3, 5) + t[4])
    o_ref[0, 2 * c4:3 * c4, :] = b3.astype(o_ref.dtype)

    # Branch 4: maxpool(3, stride 1, pad 1) over x (padding value -inf), then 1x1 conv.
    x_inf = jnp.where(valid, xw, jnp.asarray(-jnp.inf, dtype=xw.dtype))
    m = jnp.maximum(jnp.maximum(central(x_inf, HALO - 1), central(x_inf, HALO)),
                    central(x_inf, HALO + 1))
    # Columns outside the sequence would be all -inf; clamp so no -inf/NaN hits the MXU.
    m = jnp.where(central(valid, HALO), m, jnp.zeros_like(m))
    b4 = _leaky(jnp.dot(w4, m, preferred_element_type=jnp.float32) + t[5])
    o_ref[0, 3 * c4:4 * c4, :] = b4.astype(o_ref.dtype)


# ------------------------------------ kernels ----------------------------------------

def _row_kernel(x_ref, w134_ref, w4_ref, wk_ref, t_ref, o_ref):
    """Row-resident path: whole (Cin, L) row per grid step, grid=(N,)."""
    cin = x_ref.shape[1]
    length = x_ref.shape[2]
    xb = x_ref[0].astype(jnp.bfloat16)                              # (Cin, L)
    zeros = jnp.zeros((cin, HALO), jnp.bfloat16)
    xw = jnp.concatenate([zeros, xb, zeros], axis=1)                # (Cin, L + 2*HALO)
    col = jax.lax.broadcasted_iota(jnp.int32, (1, length + 2 * HALO), 1)
    valid = (col >= HALO) & (col < HALO + length)
    _emit_branches(xw, valid, w134_ref[...], w4_ref[...], wk_ref[...], t_ref[...],
                   o_ref, length)


def _tiled_kernel(x_hbm, w134_ref, w4_ref, wk_ref, t_ref, o_ref, xbuf, sem,
                  *, l_tile, length):
    """Tiled path: manual double-buffered halo DMA of x, grid=(N, n_tiles)."""
    nb = pl.program_id(0)
    j = pl.program_id(1)
    slot = j % 2
    win = l_tile + 2 * HALO

    def x_window_copy(j_src, s):
        start = pl.multiple_of(j_src * l_tile, l_tile)
        return pltpu.make_async_copy(
            x_hbm.at[nb, :, pl.ds(start, win)], xbuf.at[s], sem.at[s])

    # Prime this row's first window (core-safe under a "parallel" batch split), then
    # prefetch the next window so its DMA overlaps this step's compute.
    @pl.when(j == 0)
    def _():
        x_window_copy(j, slot).start()

    j_next = jnp.minimum(j + 1, pl.num_programs(1) - 1)

    @pl.when(j + 1 < pl.num_programs(1))
    def _():
        x_window_copy(j_next, 1 - slot).start()

    x_window_copy(j, slot).wait()
    xw = xbuf[slot]                                                 # (Cin, win) bf16

    col = jax.lax.broadcasted_iota(jnp.int32, (1, win), 1)
    gpos = j * l_tile + col - HALO
    valid = (gpos >= 0) & (gpos < length)

    _emit_branches(xw, valid, w134_ref[...], w4_ref[...], wk_ref[...], t_ref[...],
                   o_ref, l_tile)


# ------------------------------------ wrapper ----------------------------------------

def _vmem_capacity_bytes():
    try:
        return int(pltpu.get_tpu_info().vmem_capacity_bytes)
    except Exception:
        return 64 * _MIB        # conservative: v7x has 64 MiB per TensorCore


def _working_set_bytes(cin, c4, width, out_itemsize):
    """Rough per-grid-step VMEM working set (double-buffered blocks + live temporaries)."""
    win = width + 2 * HALO
    cout = 4 * c4
    x_block = cin * width * 4 * 2                 # input block (f32 or bf16 halo buf), x2
    out_block = cout * width * out_itemsize * 2   # output block, double buffered
    # xw/x_inf (bf16), y (f32), h2/h3 (f32 + bf16), per-branch f32 results, maxpool m.
    temps = (2 * cin * 2 + 3 * c4 * 4 + 2 * c4 * 6 + 4 * c4 * 4 + cin * 2) * win
    weights = (4 * c4 * cin + 8 * c4 * c4) * 2 * 2 + 6 * c4 * 4 * 2
    return x_block + out_block + 2 * temps + weights + 512 * 1024


def inception_block_1d(x_ncl, packed, *, l_tile=512, out_dtype=jnp.bfloat16,
                       mode="auto", vmem_limit_bytes=None):
    """x_ncl: (N, Cin, L) float32.  packed: see pack_for_kernel().  Returns (N, 4*c4, L)."""
    n, cin, length = x_ncl.shape
    c4 = packed["w4"].shape[0]
    cout = 4 * c4
    itemsize = jnp.dtype(out_dtype).itemsize
    cap = _vmem_capacity_bytes()

    if mode == "auto":
        mode = "row" if _working_set_bytes(cin, c4, length, itemsize) <= 0.4 * cap \
            else "tiled"

    weight_args = (packed["w134"], packed["w4"], packed["wk"], packed["t"])
    weight_specs_1d = [
        pl.BlockSpec((3 * c4, cin), lambda nb: (0, 0)),
        pl.BlockSpec((c4, cin), lambda nb: (0, 0)),
        pl.BlockSpec((8, c4, c4), lambda nb: (0, 0, 0)),
        pl.BlockSpec((6, c4, 1), lambda nb: (0, 0, 0)),
    ]
    weight_specs_2d = [
        pl.BlockSpec((3 * c4, cin), lambda nb, j: (0, 0)),
        pl.BlockSpec((c4, cin), lambda nb, j: (0, 0)),
        pl.BlockSpec((8, c4, c4), lambda nb, j: (0, 0, 0)),
        pl.BlockSpec((6, c4, 1), lambda nb, j: (0, 0, 0)),
    ]

    if mode == "row":
        ws = _working_set_bytes(cin, c4, length, itemsize)
        limit = vmem_limit_bytes or int(min(max(2 * ws, 32 * _MIB), int(0.8 * cap)))
        return pl.pallas_call(
            _row_kernel,
            out_shape=jax.ShapeDtypeStruct((n, cout, length), out_dtype),
            grid=(n,),
            in_specs=[pl.BlockSpec((1, cin, length), lambda nb: (nb, 0, 0))]
                     + weight_specs_1d,
            out_specs=pl.BlockSpec((1, cout, length), lambda nb: (nb, 0, 0)),
            compiler_params=pltpu.CompilerParams(
                dimension_semantics=("parallel",),
                vmem_limit_bytes=limit,
            ),
        )(x_ncl, *weight_args)

    # ---------------------------------- tiled path -----------------------------------
    # Pick a lane-aligned tile: <= l_tile, shrunk until the working set fits VMEM, then
    # balanced so the padded length lp = n_tiles * tile does not overshoot length by much.
    tile_req = max(128, (min(l_tile, 128 * pl.cdiv(length, 128)) // 128) * 128)
    while tile_req > 128 and _working_set_bytes(cin, c4, tile_req, itemsize) > 0.4 * cap:
        tile_req = max(128, ((tile_req // 2) // 128) * 128)
    n_tiles = pl.cdiv(length, tile_req)
    tile = 128 * pl.cdiv(length, 128 * n_tiles)

    lp = n_tiles * tile
    win = tile + 2 * HALO
    ragged = lp != length
    out_len = lp if ragged else length

    ws = _working_set_bytes(cin, c4, tile, itemsize)
    limit = vmem_limit_bytes or int(min(max(2 * ws, 32 * _MIB), int(0.8 * cap)))

    # TODO(synk): halo pad of x (and, for ragged lengths, the output slice below) are extra
    # HBM passes; a clamped manual DMA + masked final-block store would remove them.
    x_pad = jnp.pad(x_ncl.astype(jnp.bfloat16),
                    ((0, 0), (0, 0), (HALO, HALO + lp - length)))

    kernel = functools.partial(_tiled_kernel, l_tile=tile, length=length)
    out = pl.pallas_call(
        kernel,
        out_shape=jax.ShapeDtypeStruct((n, cout, out_len), out_dtype),
        grid=(n, n_tiles),
        in_specs=[pl.BlockSpec(memory_space=pl.ANY)]       # x: raw HBM, manual halo DMA
                 + weight_specs_2d,
        out_specs=pl.BlockSpec((1, cout, tile), lambda nb, j: (nb, 0, j)),
        scratch_shapes=[
            pltpu.VMEM((2, cin, win), jnp.bfloat16),       # double-buffered halo window
            pltpu.SemaphoreType.DMA((2,)),
        ],
        compiler_params=pltpu.CompilerParams(
            dimension_semantics=("parallel", "arbitrary"),
            vmem_limit_bytes=limit,
        ),
    )(x_pad, *weight_args)
    return out[:, :, :length] if ragged else out


# ----------------------------- parameter construction --------------------------------

def init_raw_params(key, in_channels, out_channels):
    """Random parameters mimicking the PyTorch module (conv weight/bias + eval BN stats)."""
    c4 = out_channels // 4

    def conv(k, co, ci, ksize):
        kw, kb = jax.random.split(k)
        w = 0.2 * jax.random.normal(kw, (co, ci, ksize), jnp.float32)
        b = 0.1 * jax.random.normal(kb, (co,), jnp.float32)
        return w, b

    def bn(k, c):
        k1, k2, k3, k4 = jax.random.split(k, 4)
        gamma = 1.0 + 0.1 * jax.random.normal(k1, (c,), jnp.float32)
        beta = 0.1 * jax.random.normal(k2, (c,), jnp.float32)
        mean = 0.1 * jax.random.normal(k3, (c,), jnp.float32)
        var = 0.5 + jax.random.uniform(k4, (c,), jnp.float32)
        return gamma, beta, mean, var

    ks = jax.random.split(key, 12)
    return {
        "conv1": conv(ks[0], c4, in_channels, 1), "bn1": bn(ks[1], c4),
        "conv2a": conv(ks[2], c4, in_channels, 1), "bn2a": bn(ks[3], c4),
        "conv2b": conv(ks[4], c4, c4, 3), "bn2b": bn(ks[5], c4),
        "conv3a": conv(ks[6], c4, in_channels, 1), "bn3a": bn(ks[7], c4),
        "conv3b": conv(ks[8], c4, c4, 5), "bn3b": bn(ks[9], c4),
        "conv4": conv(ks[10], c4, in_channels, 1), "bn4": bn(ks[11], c4),
    }


def fold_params(raw):
    """Fold eval-mode BatchNorm into each conv: W' = s*W, t = s*(b - mean) + beta."""
    def fold(conv, bn):
        w, b = conv
        gamma, beta, mean, var = bn
        s = gamma / jnp.sqrt(var + BN_EPS)
        return w * s[:, None, None], s * (b - mean) + beta

    f = {}
    f["w1"], f["t1"] = fold(raw["conv1"], raw["bn1"])
    f["w2a"], f["t2a"] = fold(raw["conv2a"], raw["bn2a"])
    f["w2b"], f["t2b"] = fold(raw["conv2b"], raw["bn2b"])
    f["w3a"], f["t3a"] = fold(raw["conv3a"], raw["bn3a"])
    f["w3b"], f["t3b"] = fold(raw["conv3b"], raw["bn3b"])
    f["w4"], f["t4"] = fold(raw["conv4"], raw["bn4"])
    return f


def pack_for_kernel(folded, dtype=jnp.bfloat16):
    """Pack folded params: aligned fused 1x1 weights, separate w4, stacked taps, shifts."""
    w134 = jnp.concatenate([folded["w1"][:, :, 0], folded["w2a"][:, :, 0],
                            folded["w3a"][:, :, 0]], axis=0).astype(dtype)   # (3*c4, Cin)
    w4 = folded["w4"][:, :, 0].astype(dtype)                                 # (c4, Cin)
    taps = ([folded["w2b"][:, :, kk] for kk in range(3)]
            + [folded["w3b"][:, :, kk] for kk in range(5)])
    wk = jnp.stack(taps, axis=0).astype(dtype)                               # (8, c4, c4)
    t = jnp.stack([folded["t1"], folded["t2a"], folded["t2b"],
                   folded["t3a"], folded["t3b"], folded["t4"]],
                  axis=0)[:, :, None].astype(jnp.float32)                    # (6, c4, 1)
    return {"w134": w134, "w4": w4, "wk": wk, "t": t}


# ------------------------------- plain-JAX references --------------------------------

def reference_forward(x, raw):
    """PyTorch-faithful f32 reference (Conv1d -> eval BatchNorm1d -> LeakyReLU per branch)."""
    def conv1d(h, w, b, pad):
        y = jax.lax.conv_general_dilated(
            h, w, window_strides=(1,), padding=[(pad, pad)],
            dimension_numbers=("NCH", "OIH", "NCH"))
        return y + b[None, :, None]

    def bnorm(h, gamma, beta, mean, var):
        return ((h - mean[None, :, None]) / jnp.sqrt(var[None, :, None] + BN_EPS)
                * gamma[None, :, None] + beta[None, :, None])

    def cbr(h, conv, bn, pad):
        return _leaky(bnorm(conv1d(h, *conv, pad), *bn))

    b1 = cbr(x, raw["conv1"], raw["bn1"], 0)
    b2 = cbr(cbr(x, raw["conv2a"], raw["bn2a"], 0), raw["conv2b"], raw["bn2b"], 1)
    b3 = cbr(cbr(x, raw["conv3a"], raw["bn3a"], 0), raw["conv3b"], raw["bn3b"], 2)
    mp = jax.lax.reduce_window(x, -jnp.inf, jax.lax.max,
                               (1, 1, 3), (1, 1, 1),
                               [(0, 0), (0, 0), (1, 1)])
    b4 = cbr(mp, raw["conv4"], raw["bn4"], 0)
    return jnp.concatenate([b1, b2, b3, b4], axis=1)


def folded_reference(x, folded, matmul_dtype=jnp.float32):
    """Reference over folded params; matmul_dtype=bfloat16 mirrors the kernel's rounding."""
    cast = lambda a: a.astype(matmul_dtype)
    length = x.shape[-1]
    xc = cast(x)

    def pw(w, h, t):                          # 1x1 conv + shift + LeakyReLU
        y = jnp.einsum("oc,ncl->nol", cast(w[:, :, 0]), cast(h),
                       preferred_element_type=jnp.float32)
        return _leaky(y + t[None, :, None])

    def kconv(w, h, t):                       # k-tap "same" conv + shift + LeakyReLU
        k = w.shape[-1]
        pad = (k - 1) // 2
        hp = jnp.pad(cast(h), ((0, 0), (0, 0), (pad, pad)))
        y = sum(jnp.einsum("oc,ncl->nol", cast(w[:, :, kk]),
                           hp[:, :, kk:kk + length],
                           preferred_element_type=jnp.float32)
                for kk in range(k))
        return _leaky(y + t[None, :, None])

    b1 = pw(folded["w1"], xc, folded["t1"])
    b2 = kconv(folded["w2b"], pw(folded["w2a"], xc, folded["t2a"]), folded["t2b"])
    b3 = kconv(folded["w3b"], pw(folded["w3a"], xc, folded["t3a"]), folded["t3b"])
    xp = jnp.pad(xc, ((0, 0), (0, 0), (1, 1)), constant_values=-jnp.inf)
    m = jnp.maximum(jnp.maximum(xp[:, :, 0:length], xp[:, :, 1:length + 1]),
                    xp[:, :, 2:length + 2])
    b4 = pw(folded["w4"], m, folded["t4"])
    return jnp.concatenate([b1, b2, b3, b4], axis=1)


# ----------------------------------------- main ---------------------------------------

if __name__ == "__main__":
    N, IN_CH, OUT_CH = 2, 4, 32
    key = jax.random.PRNGKey(0)
    k_p, k_x1, k_x2, k_x3 = jax.random.split(key, 4)

    raw = init_raw_params(k_p, IN_CH, OUT_CH)
    folded = fold_params(raw)
    packed = pack_for_kernel(folded)

    def check(out, x):
        ref_b = folded_reference(x, folded, matmul_dtype=jnp.bfloat16)
        ref_t = reference_forward(x, raw)
        o = out.astype(jnp.float32)
        assert o.shape == ref_t.shape, (o.shape, ref_t.shape)
        # Matches a reference that mirrors the kernel's bf16 matmul-input rounding.
        assert jnp.allclose(o, ref_b, rtol=3e-2, atol=3e-2), \
            float(jnp.max(jnp.abs(o - ref_b)))
        # Stays close to the exact f32 PyTorch-style module output.
        assert jnp.allclose(o, ref_t, rtol=1e-1, atol=1e-1), \
            float(jnp.max(jnp.abs(o - ref_t)))

    # BN folding algebra is exact (up to f32 rounding).
    x0 = jax.random.normal(k_x1, (N, IN_CH, 16), jnp.float32)
    assert jnp.allclose(folded_reference(x0, folded), reference_forward(x0, raw),
                        rtol=1e-4, atol=1e-4)

    # 1) Row-resident path (auto-selected for tiny rows), bf16 output.
    fwd_row = jax.jit(functools.partial(inception_block_1d, mode="auto"))
    out_row = jax.block_until_ready(fwd_row(x0, packed))
    check(out_row, x0)

    # 2) Tiled path, ragged length (halo across tile edges, padded-output fallback), f32 out.
    x1 = jax.random.normal(k_x2, (N, IN_CH, 200), jnp.float32)
    fwd_tiled = jax.jit(functools.partial(inception_block_1d, mode="tiled",
                                          l_tile=128, out_dtype=jnp.float32))
    out_tiled = jax.block_until_ready(fwd_tiled(x1, packed))
    check(out_tiled, x1)

    # 3) Tiled path, length divisible by the tile (no output slice), bf16 out.
    x2 = jax.random.normal(k_x3, (N, IN_CH, 256), jnp.float32)
    fwd_tiled2 = jax.jit(functools.partial(inception_block_1d, mode="tiled", l_tile=128))
    out_tiled2 = jax.block_until_ready(fwd_tiled2(x2, packed))
    check(out_tiled2, x2)

    print("KERNEL_OK")
</pallas_src>

<mosaic_0001>
module attributes {stable_mosaic.version = 11 : i64} {
  func.func @_row_kernel(%arg0: i32, %arg1: memref<1x4x16xf32, #tpu.memory_space<vmem>>, %arg2: memref<24x4xbf16, #tpu.memory_space<vmem>>, %arg3: memref<8x4xbf16, #tpu.memory_space<vmem>>, %arg4: memref<8x8x8xbf16, #tpu.memory_space<vmem>>, %arg5: memref<6x8x1xf32, #tpu.memory_space<vmem>>, %arg6: memref<1x32x16xbf16, #tpu.memory_space<vmem>>) attributes {dimension_semantics = [#tpu.dimension_semantics<parallel>], iteration_bounds = array<i64: 2>, scalar_prefetch = 0 : i64, scratch_operands = 0 : i64, tpu.core_type = #tpu.core_type<tc>, window_params = [{transform_indices = @transform_0, window_bounds = array<i64: 1, 4, 16>}, {pipeline_mode = #tpu.pipeline_mode<synchronous>, transform_indices = @transform_1, window_bounds = array<i64: 24, 4>}, {pipeline_mode = #tpu.pipeline_mode<synchronous>, transform_indices = @transform_2, window_bounds = array<i64: 8, 4>}, {pipeline_mode = #tpu.pipeline_mode<synchronous>, transform_indices = @transform_3, window_bounds = array<i64: 8, 8, 8>}, {pipeline_mode = #tpu.pipeline_mode<synchronous>, transform_indices = @transform_4, window_bounds = array<i64: 6, 8, 1>}, {transform_indices = @transform_5, window_bounds = array<i64: 1, 32, 16>}]} {
    %c0 = arith.constant 0 : index
    %c0_0 = arith.constant 0 : index
    %c0_1 = arith.constant 0 : index
    %0 = vector.load %arg1[%c0, %c0_0, %c0_1] : memref<1x4x16xf32, #tpu.memory_space<vmem>>, vector<1x4x16xf32>
    %1 = vector.shape_cast %0 : vector<1x4x16xf32> to vector<4x16xf32>
    %2 = arith.truncf %1 : vector<4x16xf32> to vector<4x16xbf16>
    %cst = arith.constant 0.000000e+00 : bf16
    %3 = vector.broadcast %cst : bf16 to vector<4x2xbf16>
    %4 = tpu.concatenate %3, %2, %3 in 1 : vector<4x2xbf16>, vector<4x16xbf16>, vector<4x2xbf16> -> vector<4x20xbf16>
    %5 = tpu.iota {dimensions = array<i32: 1>} : vector<1x20xi32>
    %c2_i32 = arith.constant 2 : i32
    %6 = vector.broadcast %c2_i32 : i32 to vector<1x20xi32>
    %7 = arith.cmpi sge, %5, %6 : vector<1x20xi32>
    %c18_i32 = arith.constant 18 : i32
    %8 = vector.broadcast %c18_i32 : i32 to vector<1x20xi32>
    %9 = arith.cmpi slt, %5, %8 : vector<1x20xi32>
    %10 = arith.andi %7, %9 : vector<1x20xi1>
    %c0_2 = arith.constant 0 : index
    %c0_3 = arith.constant 0 : index
    %11 = vector.load %arg2[%c0_2, %c0_3] : memref<24x4xbf16, #tpu.memory_space<vmem>>, vector<24x4xbf16>
    %c0_4 = arith.constant 0 : index
    %c0_5 = arith.constant 0 : index
    %12 = vector.load %arg3[%c0_4, %c0_5] : memref<8x4xbf16, #tpu.memory_space<vmem>>, vector<8x4xbf16>
    %c0_6 = arith.constant 0 : index
    %c0_7 = arith.constant 0 : index
    %c0_8 = arith.constant 0 : index
    %13 = vector.load %arg4[%c0_6, %c0_7, %c0_8] : memref<8x8x8xbf16, #tpu.memory_space<vmem>>, vector<8x8x8xbf16>
    %c0_9 = arith.constant 0 : index
    %c0_10 = arith.constant 0 : index
    %c0_11 = arith.constant 0 : index
    %14 = vector.load %arg5[%c0_9, %c0_10, %c0_11] : memref<6x8x1xf32, #tpu.memory_space<vmem>>, vector<6x8x1xf32>
    %cst_12 = arith.constant dense<0.000000e+00> : vector<24x20xf32>
    %15 = tpu.matmul %11, %4, %cst_12 {dimension_numbers = #tpu.dot_dimension_numbers<[1], [0], [0], [1], [0, 0, 1, 1], [], []>} : vector<24x4xbf16>, vector<4x20xbf16>, vector<24x20xf32> -> vector<24x20xf32>
    %16 = vector.extract_strided_slice %15 {offsets = [0, 0], sizes = [8, 20], strides = [1, 1]} : vector<24x20xf32> to vector<8x20xf32>
    %17 = vector.extract_strided_slice %16 {offsets = [0, 2], sizes = [8, 16], strides = [1, 1]} : vector<8x20xf32> to vector<8x16xf32>
    %18 = vector.extract_strided_slice %14 {offsets = [0, 0, 0], sizes = [1, 8, 1], strides = [1, 1, 1]} : vector<6x8x1xf32> to vector<1x8x1xf32>
    %19 = vector.shape_cast %18 : vector<1x8x1xf32> to vector<8x1xf32>
    %20 = vector.broadcast %19 : vector<8x1xf32> to vector<8x16xf32>
    %21 = arith.addf %17, %20 : vector<8x16xf32>
    %cst_13 = arith.constant 0.000000e+00 : f32
    %22 = vector.broadcast %cst_13 : f32 to vector<8x16xf32>
    %23 = arith.cmpf ogt, %21, %22 : vector<8x16xf32>
    %cst_14 = arith.constant 2.000000e-02 : f32
    %24 = vector.broadcast %cst_14 : f32 to vector<8x16xf32>
    %25 = arith.mulf %24, %21 : vector<8x16xf32>
    %26 = arith.select %23, %21, %25 : vector<8x16xi1>, vector<8x16xf32>
    %27 = arith.truncf %26 : vector<8x16xf32> to vector<8x16xbf16>
    %c0_15 = arith.constant 0 : index
    %c0_16 = arith.constant 0 : index
    %c0_17 = arith.constant 0 : index
    %28 = vector.load %arg6[%c0_15, %c0_16, %c0_17] : memref<1x32x16xbf16, #tpu.memory_space<vmem>>, vector<1x8x16xbf16>
    %29 = vector.shape_cast %28 : vector<1x8x16xbf16> to vector<8x16xbf16>
    %30 = vector.shape_cast %27 : vector<8x16xbf16> to vector<1x8x16xbf16>
    tpu.vector_store %arg6[%c0_15, %c0_16, %c0_17], %30 {strides = array<i32>} : memref<1x32x16xbf16, #tpu.memory_space<vmem>>, vector<1x8x16xbf16>,
    %31 = vector.extract_strided_slice %15 {offsets = [8, 0], sizes = [8, 20], strides = [1, 1]} : vector<24x20xf32> to vector<8x20xf32>
    %32 = vector.extract_strided_slice %14 {offsets = [1, 0, 0], sizes = [1, 8, 1], strides = [1, 1, 1]} : vector<6x8x1xf32> to vector<1x8x1xf32>
    %33 = vector.shape_cast %32 : vector<1x8x1xf32> to vector<8x1xf32>
    %34 = vector.broadcast %33 : vector<8x1xf32> to vector<8x20xf32>
    %35 = arith.addf %31, %34 : vector<8x20xf32>
    %cst_18 = arith.constant 0.000000e+00 : f32
    %36 = vector.broadcast %cst_18 : f32 to vector<8x20xf32>
    %37 = arith.cmpf ogt, %35, %36 : vector<8x20xf32>
    %cst_19 = arith.constant 2.000000e-02 : f32
    %38 = vector.broadcast %cst_19 : f32 to vector<8x20xf32>
    %39 = arith.mulf %38, %35 : vector<8x20xf32>
    %40 = arith.select %37, %35, %39 : vector<8x20xi1>, vector<8x20xf32>
    %41 = vector.extract_strided_slice %15 {offsets = [16, 0], sizes = [8, 20], strides = [1, 1]} : vector<24x20xf32> to vector<8x20xf32>
    %42 = vector.extract_strided_slice %14 {offsets = [3, 0, 0], sizes = [1, 8, 1], strides = [1, 1, 1]} : vector<6x8x1xf32> to vector<1x8x1xf32>
    %43 = vector.shape_cast %42 : vector<1x8x1xf32> to vector<8x1xf32>
    %44 = vector.broadcast %43 : vector<8x1xf32> to vector<8x20xf32>
    %45 = arith.addf %41, %44 : vector<8x20xf32>
    %cst_20 = arith.constant 0.000000e+00 : f32
    %46 = vector.broadcast %cst_20 : f32 to vector<8x20xf32>
    %47 = arith.cmpf ogt, %45, %46 : vector<8x20xf32>
    %cst_21 = arith.constant 2.000000e-02 : f32
    %48 = vector.broadcast %cst_21 : f32 to vector<8x20xf32>
    %49 = arith.mulf %48, %45 : vector<8x20xf32>
    %50 = arith.select %47, %45, %49 : vector<8x20xi1>, vector<8x20xf32>
    %cst_22 = arith.constant 0.000000e+00 : f32
    %51 = vector.shape_cast %10 : vector<1x20xi1> to vector<1x20xi1>
    %52 = vector.broadcast %51 : vector<1x20xi1> to vector<8x20xi1>
    %53 = vector.broadcast %cst_22 : f32 to vector<8x20xf32>
    %54 = arith.select %52, %40, %53 : vector<8x20xi1>, vector<8x20xf32>
    %55 = arith.truncf %54 : vector<8x20xf32> to vector<8x20xbf16>
    %cst_23 = arith.constant 0.000000e+00 : f32
    %56 = vector.shape_cast %10 : vector<1x20xi1> to vector<1x20xi1>
    %57 = vector.broadcast %56 : vector<1x20xi1> to vector<8x20xi1>
    %58 = vector.broadcast %cst_23 : f32 to vector<8x20xf32>
    %59 = arith.select %57, %50, %58 : vector<8x20xi1>, vector<8x20xf32>
    %60 = arith.truncf %59 : vector<8x20xf32> to vector<8x20xbf16>
    %61 = vector.extract_strided_slice %13 {offsets = [0, 0, 0], sizes = [1, 8, 8], strides = [1, 1, 1]} : vector<8x8x8xbf16> to vector<1x8x8xbf16>
    %62 = vector.shape_cast %61 : vector<1x8x8xbf16> to vector<8x8xbf16>
    %63 = vector.extract_strided_slice %55 {offsets = [0, 1], sizes = [8, 16], strides = [1, 1]} : vector<8x20xbf16> to vector<8x16xbf16>
    %cst_24 = arith.constant dense<0.000000e+00> : vector<8x16xf32>
    %64 = tpu.matmul %62, %63, %cst_24 {dimension_numbers = #tpu.dot_dimension_numbers<[1], [0], [0], [1], [0, 0, 1, 1], [], []>} : vector<8x8xbf16>, vector<8x16xbf16>, vector<8x16xf32> -> vector<8x16xf32>
    %65 = vector.extract_strided_slice %13 {offsets = [1, 0, 0], sizes = [1, 8, 8], strides = [1, 1, 1]} : vector<8x8x8xbf16> to vector<1x8x8xbf16>
    %66 = vector.shape_cast %65 : vector<1x8x8xbf16> to vector<8x8xbf16>
    %67 = vector.extract_strided_slice %55 {offsets = [0, 2], sizes = [8, 16], strides = [1, 1]} : vector<8x20xbf16> to vector<8x16xbf16>
    %cst_25 = arith.constant dense<0.000000e+00> : vector<8x16xf32>
    %68 = tpu.matmul %66, %67, %cst_25 {dimension_numbers = #tpu.dot_dimension_numbers<[1], [0], [0], [1], [0, 0, 1, 1], [], []>} : vector<8x8xbf16>, vector<8x16xbf16>, vector<8x16xf32> -> vector<8x16xf32>
    %69 = arith.addf %64, %68 : vector<8x16xf32>
    %70 = vector.extract_strided_slice %13 {offsets = [2, 0, 0], sizes = [1, 8, 8], strides = [1, 1, 1]} : vector<8x8x8xbf16> to vector<1x8x8xbf16>
    %71 = vector.shape_cast %70 : vector<1x8x8xbf16> to vector<8x8xbf16>
    %72 = vector.extract_strided_slice %55 {offsets = [0, 3], sizes = [8, 16], strides = [1, 1]} : vector<8x20xbf16> to vector<8x16xbf16>
    %cst_26 = arith.constant dense<0.000000e+00> : vector<8x16xf32>
    %73 = tpu.matmul %71, %72, %cst_26 {dimension_numbers = #tpu.dot_dimension_numbers<[1], [0], [0], [1], [0, 0, 1, 1], [], []>} : vector<8x8xbf16>, vector<8x16xbf16>, vector<8x16xf32> -> vector<8x16xf32>
    %74 = arith.addf %69, %73 : vector<8x16xf32>
    %75 = vector.extract_strided_slice %14 {offsets = [2, 0, 0], sizes = [1, 8, 1], strides = [1, 1, 1]} : vector<6x8x1xf32> to vector<1x8x1xf32>
    %76 = vector.shape_cast %75 : vector<1x8x1xf32> to vector<8x1xf32>
    %77 = vector.broadcast %76 : vector<8x1xf32> to vector<8x16xf32>
    %78 = arith.addf %74, %77 : vector<8x16xf32>
    %cst_27 = arith.constant 0.000000e+00 : f32
    %79 = vector.broadcast %cst_27 : f32 to vector<8x16xf32>
    %80 = arith.cmpf ogt, %78, %79 : vector<8x16xf32>
    %cst_28 = arith.constant 2.000000e-02 : f32
    %81 = vector.broadcast %cst_28 : f32 to vector<8x16xf32>
    %82 = arith.mulf %81, %78 : vector<8x16xf32>
    %83 = arith.select %80, %78, %82 : vector<8x16xi1>, vector<8x16xf32>
    %84 = arith.truncf %83 : vector<8x16xf32> to vector<8x16xbf16>
    %c0_29 = arith.constant 0 : index
    %c8 = arith.constant 8 : index
    %c0_30 = arith.constant 0 : index
    %85 = vector.load %arg6[%c0_29, %c8, %c0_30] : memref<1x32x16xbf16, #tpu.memory_space<vmem>>, vector<1x8x16xbf16>
    %86 = vector.shape_cast %85 : vector<1x8x16xbf16> to vector<8x16xbf16>
    %87 = vector.shape_cast %84 : vector<8x16xbf16> to vector<1x8x16xbf16>
    tpu.vector_store %arg6[%c0_29, %c8, %c0_30], %87 {strides = array<i32>} : memref<1x32x16xbf16, #tpu.memory_space<vmem>>, vector<1x8x16xbf16>,
    %88 = vector.extract_strided_slice %13 {offsets = [3, 0, 0], sizes = [1, 8, 8], strides = [1, 1, 1]} : vector<8x8x8xbf16> to vector<1x8x8xbf16>
    %89 = vector.shape_cast %88 : vector<1x8x8xbf16> to vector<8x8xbf16>
    %90 = vector.extract_strided_slice %60 {offsets = [0, 0], sizes = [8, 16], strides = [1, 1]} : vector<8x20xbf16> to vector<8x16xbf16>
    %cst_31 = arith.constant dense<0.000000e+00> : vector<8x16xf32>
    %91 = tpu.matmul %89, %90, %cst_31 {dimension_numbers = #tpu.dot_dimension_numbers<[1], [0], [0], [1], [0, 0, 1, 1], [], []>} : vector<8x8xbf16>, vector<8x16xbf16>, vector<8x16xf32> -> vector<8x16xf32>
    %92 = vector.extract_strided_slice %13 {offsets = [4, 0, 0], sizes = [1, 8, 8], strides = [1, 1, 1]} : vector<8x8x8xbf16> to vector<1x8x8xbf16>
    %93 = vector.shape_cast %92 : vector<1x8x8xbf16> to vector<8x8xbf16>
    %94 = vector.extract_strided_slice %60 {offsets = [0, 1], sizes = [8, 16], strides = [1, 1]} : vector<8x20xbf16> to vector<8x16xbf16>
    %cst_32 = arith.constant dense<0.000000e+00> : vector<8x16xf32>
    %95 = tpu.matmul %93, %94, %cst_32 {dimension_numbers = #tpu.dot_dimension_numbers<[1], [0], [0], [1], [0, 0, 1, 1], [], []>} : vector<8x8xbf16>, vector<8x16xbf16>, vector<8x16xf32> -> vector<8x16xf32>
    %96 = arith.addf %91, %95 : vector<8x16xf32>
    %97 = vector.extract_strided_slice %13 {offsets = [5, 0, 0], sizes = [1, 8, 8], strides = [1, 1, 1]} : vector<8x8x8xbf16> to vector<1x8x8xbf16>
    %98 = vector.shape_cast %97 : vector<1x8x8xbf16> to vector<8x8xbf16>
    %99 = vector.extract_strided_slice %60 {offsets = [0, 2], sizes = [8, 16], strides = [1, 1]} : vector<8x20xbf16> to vector<8x16xbf16>
    %cst_33 = arith.constant dense<0.000000e+00> : vector<8x16xf32>
    %100 = tpu.matmul %98, %99, %cst_33 {dimension_numbers = #tpu.dot_dimension_numbers<[1], [0], [0], [1], [0, 0, 1, 1], [], []>} : vector<8x8xbf16>, vector<8x16xbf16>, vector<8x16xf32> -> vector<8x16xf32>
    %101 = arith.addf %96, %100 : vector<8x16xf32>
    %102 = vector.extract_strided_slice %13 {offsets = [6, 0, 0], sizes = [1, 8, 8], strides = [1, 1, 1]} : vector<8x8x8xbf16> to vector<1x8x8xbf16>
    %103 = vector.shape_cast %102 : vector<1x8x8xbf16> to vector<8x8xbf16>
    %104 = vector.extract_strided_slice %60 {offsets = [0, 3], sizes = [8, 16], strides = [1, 1]} : vector<8x20xbf16> to vector<8x16xbf16>
    %cst_34 = arith.constant dense<0.000000e+00> : vector<8x16xf32>
    %105 = tpu.matmul %103, %104, %cst_34 {dimension_numbers = #tpu.dot_dimension_numbers<[1], [0], [0], [1], [0, 0, 1, 1], [], []>} : vector<8x8xbf16>, vector<8x16xbf16>, vector<8x16xf32> -> vector<8x16xf32>
    %106 = arith.addf %101, %105 : vector<8x16xf32>
    %107 = vector.extract_strided_slice %13 {offsets = [7, 0, 0], sizes = [1, 8, 8], strides = [1, 1, 1]} : vector<8x8x8xbf16> to vector<1x8x8xbf16>
    %108 = vector.shape_cast %107 : vector<1x8x8xbf16> to vector<8x8xbf16>
    %109 = vector.extract_strided_slice %60 {offsets = [0, 4], sizes = [8, 16], strides = [1, 1]} : vector<8x20xbf16> to vector<8x16xbf16>
    %cst_35 = arith.constant dense<0.000000e+00> : vector<8x16xf32>
    %110 = tpu.matmul %108, %109, %cst_35 {dimension_numbers = #tpu.dot_dimension_numbers<[1], [0], [0], [1], [0, 0, 1, 1], [], []>} : vector<8x8xbf16>, vector<8x16xbf16>, vector<8x16xf32> -> vector<8x16xf32>
    %111 = arith.addf %106, %110 : vector<8x16xf32>
    %112 = vector.extract_strided_slice %14 {offsets = [4, 0, 0], sizes = [1, 8, 1], strides = [1, 1, 1]} : vector<6x8x1xf32> to vector<1x8x1xf32>
    %113 = vector.shape_cast %112 : vector<1x8x1xf32> to vector<8x1xf32>
    %114 = vector.broadcast %113 : vector<8x1xf32> to vector<8x16xf32>
    %115 = arith.addf %111, %114 : vector<8x16xf32>
    %cst_36 = arith.constant 0.000000e+00 : f32
    %116 = vector.broadcast %cst_36 : f32 to vector<8x16xf32>
    %117 = arith.cmpf ogt, %115, %116 : vector<8x16xf32>
    %cst_37 = arith.constant 2.000000e-02 : f32
    %118 = vector.broadcast %cst_37 : f32 to vector<8x16xf32>
    %119 = arith.mulf %118, %115 : vector<8x16xf32>
    %120 = arith.select %117, %115, %119 : vector<8x16xi1>, vector<8x16xf32>
    %121 = arith.truncf %120 : vector<8x16xf32> to vector<8x16xbf16>
    %c0_38 = arith.constant 0 : index
    %c16 = arith.constant 16 : index
    %c0_39 = arith.constant 0 : index
    %122 = vector.load %arg6[%c0_38, %c16, %c0_39] : memref<1x32x16xbf16, #tpu.memory_space<vmem>>, vector<1x8x16xbf16>
    %123 = vector.shape_cast %122 : vector<1x8x16xbf16> to vector<8x16xbf16>
    %124 = vector.shape_cast %121 : vector<8x16xbf16> to vector<1x8x16xbf16>
    tpu.vector_store %arg6[%c0_38, %c16, %c0_39], %124 {strides = array<i32>} : memref<1x32x16xbf16, #tpu.memory_space<vmem>>, vector<1x8x16xbf16>,
    %cst_40 = arith.constant 0xFF80 : bf16
    %125 = vector.shape_cast %10 : vector<1x20xi1> to vector<1x20xi1>
    %126 = vector.broadcast %125 : vector<1x20xi1> to vector<4x20xi1>
    %127 = vector.broadcast %cst_40 : bf16 to vector<4x20xbf16>
    %128 = arith.select %126, %4, %127 : vector<4x20xi1>, vector<4x20xbf16>
    %129 = vector.extract_strided_slice %128 {offsets = [0, 1], sizes = [4, 16], strides = [1, 1]} : vector<4x20xbf16> to vector<4x16xbf16>
    %130 = vector.extract_strided_slice %128 {offsets = [0, 2], sizes = [4, 16], strides = [1, 1]} : vector<4x20xbf16> to vector<4x16xbf16>
    %131 = arith.maximumf %129, %130 : vector<4x16xbf16>
    %132 = vector.extract_strided_slice %128 {offsets = [0, 3], sizes = [4, 16], strides = [1, 1]} : vector<4x20xbf16> to vector<4x16xbf16>
    %133 = arith.maximumf %131, %132 : vector<4x16xbf16>
    %134 = vector.extract_strided_slice %10 {offsets = [0, 2], sizes = [1, 16], strides = [1, 1]} : vector<1x20xi1> to vector<1x16xi1>
    %cst_41 = arith.constant 0.000000e+00 : bf16
    %135 = vector.broadcast %cst_41 : bf16 to vector<4x16xbf16>
    %136 = vector.shape_cast %134 : vector<1x16xi1> to vector<1x16xi1>
    %137 = vector.broadcast %136 : vector<1x16xi1> to vector<4x16xi1>
    %138 = arith.select %137, %133, %135 : vector<4x16xi1>, vector<4x16xbf16>
    %cst_42 = arith.constant dense<0.000000e+00> : vector<8x16xf32>
    %139 = tpu.matmul %12, %138, %cst_42 {dimension_numbers = #tpu.dot_dimension_numbers<[1], [0], [0], [1], [0, 0, 1, 1], [], []>} : vector<8x4xbf16>, vector<4x16xbf16>, vector<8x16xf32> -> vector<8x16xf32>
    %140 = vector.extract_strided_slice %14 {offsets = [5, 0, 0], sizes = [1, 8, 1], strides = [1, 1, 1]} : vector<6x8x1xf32> to vector<1x8x1xf32>
    %141 = vector.shape_cast %140 : vector<1x8x1xf32> to vector<8x1xf32>
    %142 = vector.broadcast %141 : vector<8x1xf32> to vector<8x16xf32>
    %143 = arith.addf %139, %142 : vector<8x16xf32>
    %cst_43 = arith.constant 0.000000e+00 : f32
    %144 = vector.broadcast %cst_43 : f32 to vector<8x16xf32>
    %145 = arith.cmpf ogt, %143, %144 : vector<8x16xf32>
    %cst_44 = arith.constant 2.000000e-02 : f32
    %146 = vector.broadcast %cst_44 : f32 to vector<8x16xf32>
    %147 = arith.mulf %146, %143 : vector<8x16xf32>
    %148 = arith.select %145, %143, %147 : vector<8x16xi1>, vector<8x16xf32>
    %149 = arith.truncf %148 : vector<8x16xf32> to vector<8x16xbf16>
    %c0_45 = arith.constant 0 : index
    %c24 = arith.constant 24 : index
    %c0_46 = arith.constant 0 : index
    %150 = vector.load %arg6[%c0_45, %c24, %c0_46] : memref<1x32x16xbf16, #tpu.memory_space<vmem>>, vector<1x8x16xbf16>
    %151 = vector.shape_cast %150 : vector<1x8x16xbf16> to vector<8x16xbf16>
    %152 = vector.shape_cast %149 : vector<8x16xbf16> to vector<1x8x16xbf16>
    tpu.vector_store %arg6[%c0_45, %c24, %c0_46], %152 {strides = array<i32>} : memref<1x32x16xbf16, #tpu.memory_space<vmem>>, vector<1x8x16xbf16>,
    return
  }
  func.func @transform_0(%arg0: i32) -> (i32, i32, i32) {
    %c0_i32 = arith.constant 0 : i32
    %c0_i32_0 = arith.constant 0 : i32
    %c0_i32_1 = arith.constant 0 : i32
    return %arg0, %c0_i32, %c0_i32_0 : i32, i32, i32
  }
  func.func @transform_1(%arg0: i32) -> (i32, i32) {
    %c0_i32 = arith.constant 0 : i32
    %c0_i32_0 = arith.constant 0 : i32
    %c0_i32_1 = arith.constant 0 : i32
    return %c0_i32, %c0_i32_0 : i32, i32
  }
  func.func @transform_2(%arg0: i32) -> (i32, i32) {
    %c0_i32 = arith.constant 0 : i32
    %c0_i32_0 = arith.constant 0 : i32
    %c0_i32_1 = arith.constant 0 : i32
    return %c0_i32, %c0_i32_0 : i32, i32
  }
  func.func @transform_3(%arg0: i32) -> (i32, i32, i32) {
    %c0_i32 = arith.constant 0 : i32
    %c0_i32_0 = arith.constant 0 : i32
    %c0_i32_1 = arith.constant 0 : i32
    %c0_i32_2 = arith.constant 0 : i32
    return %c0_i32, %c0_i32_0, %c0_i32_1 : i32, i32, i32
  }
  func.func @transform_4(%arg0: i32) -> (i32, i32, i32) {
    %c0_i32 = arith.constant 0 : i32
    %c0_i32_0 = arith.constant 0 : i32
    %c0_i32_1 = arith.constant 0 : i32
    %c0_i32_2 = arith.constant 0 : i32
    return %c0_i32, %c0_i32_0, %c0_i32_1 : i32, i32, i32
  }
  func.func @transform_5(%arg0: i32) -> (i32, i32, i32) {
    %c0_i32 = arith.constant 0 : i32
    %c0_i32_0 = arith.constant 0 : i32
    %c0_i32_1 = arith.constant 0 : i32
    return %arg0, %c0_i32, %c0_i32_0 : i32, i32, i32
  }
}

</mosaic_0001>

<bundles_post_ra>
// kernel: inception_block_1d.1
= control target key start
LH: loop header
LB: loop body
LE: loop exit
PB: predicated region body
PF: predicated region fallthrough
CT: control target
= control target key end

     0   :  { %s1089_s18 = smov 0   ;;  %s1243_s0 = inlined_call_operand.vmem [shape: f32[2,4,16], index: 0, kind: input, shape index: {}]   ;;  %s1244_s1 = inlined_call_operand.vmem [shape: bf16[24,4], index: 1, kind: input, shape index: {}]   ;;  %s1245_s2 = inlined_call_operand.vmem [shape: bf16[8,4], index: 2, kind: input, shape index: {}]   ;;  %s1246_s3 = inlined_call_operand.vmem [shape: bf16[8,8,8], index: 3, kind: input, shape index: {}]   ;;  %s1247_s4 = inlined_call_operand.vmem [shape: f32[6,8,1], index: 4, kind: input, shape index: {}]   ;;  %s1248_s5 = inlined_call_operand.vmem [shape: bf16[2,32,16], index: 5, kind: output, shape index: {}]  }
   0x1 LB: > { %s915_s19 = sadd.s32 4294967295, %s1049_s18   ;;  %p919_p0 = scmp.ge.s32.totalorder %s1049_s18, 1  ;;  %s1049_s18 = sphi %s1089_s18, %s15_s18  }
   0x2   : > { %p186_p1 = scmp.lt.s32.totalorder %s1049_s18, 3 }
   0x4   : > { %p187_p2 = pnand %p919_p0, %p186_p1 }
   0x5   : > { %p213_p3 = scmp.lt.s32.totalorder (!%p187_p2), %s915_s19, 1  ;;  %s1052_s28 = smov (!%p187_p2), 2  }
   0x6   : > { %190 = sbr.rel (%p187_p2) target bundleno = 697 (0x2b9), region = 40  ;;  %s1053_s6 = smov (!%p187_p2), 127  }
   0x7   : > { %s1054_s9 = smov (!%p187_p2), 126   ;;  %s1057_s10 = smov (!%p187_p2), 125  }
   0x8   : > { %s1058_s11 = smov (!%p187_p2), 124  }
   0xb   : > { %v258_v0 = vld [vmem:[%s1247_s4 + $0x18] sm:$0xff]  ;;  %v238_v1 = vlaneseq  ;;  %v1051_v2 = vmov 0   ;;  %v1041_v3 = vld [vmem:[%s1244_s1] sm:$0xff]   ;;  %s1252_s19 = smov (!%p213_p3, %s915_s19), 1  ;;  %vm269_vm0 = vcmask 31744   ;;  %v256_v10 = vld [vmem:[%s1247_s4 + $0x8] sm:$0xff] }
   0xc   : > { %1040 = vset.pattern.permute.xlu1 %v1051_v2  ;;  %1039 = vset.pattern.permute.xlu0 %v1051_v2  ;;  %s920_s24 = sshll.u32 %s1252_s19, 2  ;;  %vm231_vm5 = vcmask 15360   ;;  %vm235_vm6 = vcmask 146432   ;;  %vm276_vm7 = vcmask 1041408   ;;  %v1042_v18 = vld [vmem:[%s1244_s1 + $0x8] ss:$0 sps:$4 sm:$0xff]  }
   0xd   : > { %356 = vperm.xlu1 %1040, %v258_v0   ;;  %v239_v4 = vand.u32 127, %v238_v1  ;;  %964 = vmatprep.mubr.msk.bf16.mxu0 %vm269_vm0, %v1041_v3  ;;  %s216_s27 = scalar_lea.vmem %s1243_s0, %s920_s24  ;;  %v794_v5 = vshrl.u32 %v238_v1, 7  ;;  %v1055_v22 = vmov 0.0   ;;  %vm1056_vm8 = vmmov 0   ;;  %v255_v42 = vld [vmem:[%s1247_s4] sm:$0xff]  ;;  %v257_v43 = vld [vmem:[%s1247_s4 + $0x10] sm:$0xff] }
   0xe   : > { %v226_v6 = vld [vmem:[%s216_s27] sm:$0xf]  ;;  %968 = vmatprep.subr.bf16.mxu1 %v1055_v22  ;;  %970 = vmatprep.mubr.msk.bf16.mxu1 %vm1056_vm8, %v1055_v22  ;;  %v260_v45 = vld [vmem:[%s1247_s4 + $0x28] sm:$0xff]  ;;  %vm376_vm12 = vcmask 1043456   ;;  %v248_v50 = vld [vmem:[%s1246_s3 + $0x4] sm:$0xf] }
   0xf   : > { %vm240_vm1 = vcmp.ge.s32.totalorder %v239_v4, 2  ;;  %vm241_vm2 = vcmp.lt.s32.totalorder %v239_v4, 18  ;;  %v227_v8 = vpack.c.bf16 %v226_v6, %v226_v6  ;;  %v795_v9 = vsub.s32 0, %v794_v5  ;;  %v259_v44 = vld [vmem:[%s1247_s4 + $0x20] sm:$0xff]  ;;  %v249_v57 = vld [vmem:[%s1246_s3 + $0x8] sm:$0xf] }
  0x10   : > { %vm1110_vm3 = vmand %vm240_vm1, %vm241_vm2  ;;  %vm372_vm13 = vcmask 64512   ;;  %v247_v51 = vld [vmem:[%s1246_s3] sm:$0xf]  ;;  %v251_v58 = vld [vmem:[%s1246_s3 + $0x10] sm:$0xf]  ;;  %s939_s16 = sshll.u32 %s1252_s19, 4 }
  0x11   : > { %229 = vrot.lane.b32.xlu0 %v227_v8, %s1052_s28  ;;  %vm781_vm4 = vmpackc.low %vm1110_vm3, %vm1110_vm3  ;;  %v250_v63 = vld [vmem:[%s1246_s3 + $0xc] sm:$0xf]  ;;  %v252_v0 = vld [vmem:[%s1246_s3 + $0x14] sm:$0xf]  ;;  %s1230_s21 = scalar_lea.vmem %s1248_s5, %s939_s16  ;;  %vm343_vm15 = vcmask 125952  }
  0x12   : > { %v792_v11 = vsel %vm781_vm4, 65537, %v1051_v2  ;;  %v253_v6 = vld [vmem:[%s1246_s3 + $0x18] sm:$0xf]  ;;  %v254_v7 = vld [vmem:[%s1246_s3 + $0x1c] sm:$0xf] }
  0x13   : > { %v796_v12 = vrot.slane %v792_v11, %v795_v9 }
  0x15   : > { %347 = vperm.xlu0 %1039, %v256_v10  }
  0x19   : > { %797 = vrot.lane.b32.xlu0 %v796_v12, %s1053_s6  ;;  %v246_v12 = vld [vmem:[%s1245_s2] sm:$0xf] }
  0x83   : > { %v230_v13 = vpop.permute.xlu0 %229 }
  0x84   : > { %v234_v14 = vsel %vm231_vm5, 0, %v230_v13 }
  0x85   : > { %v236_v15 = vsel %vm235_vm6, %v234_v14, 0 }
  0x86   : > { %1022 = vmatprep.subr.msk.bf16.mxu0 %vm276_vm7, %v236_v15  ;;  %v782_v16 = vsel %vm781_vm4, %v236_v15, 4286644096  ;;  %v277_v17 = vsel %vm276_vm7, %v236_v15, 0 }
  0x87   : > { %784 = vrot.lane.b32.xlu1 %v782_v16, %s1053_s6  ;;  %963 = vmatpush3.bf16.msra.mxu0 %v277_v17 }
  0x88   : > { %v357_v20 = vpop.permute.xlu1 %356  ;;  %974 = vmatprep.subr.bf16.mxu0 %v1055_v22 }
  0x8a   : > { %965 = vmatmul.mubr.msk.bf16.vlgmr.msra.gmra.mxu0 %vm269_vm0, %v1042_v18 }
  0x8b   : > { %788 = vrot.lane.b32.xlu1 %v782_v16, %s1054_s9  ;;  %976 = vmatprep.mubr.msk.bf16.mxu0 %vm1056_vm8, %v1055_v22 }
  0x90   : > { %v348_v25 = vpop.permute.xlu0 %347 }
  0x94   : > { %v798_v39 = vpop.permute.xlu0 %797 }
  0x95   : > { %vm799_vm11 = vcmp.ne.s16.totalorder %v798_v39, 0 }
  0xf9   : > { %v785_v33 = vpop.permute.xlu1 %784 }
  0xfa   : > { %v787_v38 = vmax.bf16 %v785_v33, %v782_v16 }
  0xfd   : > { %v789_v37 = vpop.permute.xlu1 %788 }
  0xfe   : > { %v791_v40 = vmax.bf16 %v789_v37, %v787_v38 }
 0x100   : > { %v800_v41 = vsel %vm799_vm11, %v791_v40, 0 }
 0x14a   : > { %v966_v19 = vpop.f32.mrf.mxu0 }
 0x14b   : > { %v359_v23 = vadd.f32 %v966_v19, %v357_v20 }
 0x14c   : > { %v1129_v21 = vpop.f32.mrf.mxu0 }
 0x14d   : > { %v361_v27 = vmul.f32 0.02, %v359_v23  ;;  %vm360_vm9 = vcmp.gt.f32.partialorder %v359_v23, 0.0 }
 0x14e   : > { %v967_v24 = vpop.f32.mrf.mxu0 }
 0x14f   : > { %v362_v30 = vsel %vm360_vm9, %v359_v23, %v361_v27 }
 0x150   : > { %v316_v26 = vpop.f32.mrf.mxu0  ;;  %v367_v35 = vsel %vm1110_vm3, %v362_v30, 0.0 }
 0x151   : > { %v350_v28 = vadd.f32 %v348_v25, %v316_v26  ;;  %v368_v36 = vpack.c.bf16 %v367_v35, %v367_v35 }
 0x153   : > { %vm351_vm10 = vcmp.gt.f32.partialorder %v350_v28, 0.0  ;;  %v352_v29 = vmul.f32 0.02, %v350_v28  ;;  %v581_v60 = vsel %vm376_vm12, %v368_v36, 0 }
 0x155   : > { %v353_v31 = vsel %vm351_vm10, %v350_v28, %v352_v29 }
 0x156   : > { %v365_v32 = vsel %vm1110_vm3, %v353_v31, 0.0 }
 0x157   : > { %v366_v34 = vpack.c.bf16 %v365_v32, %v365_v32 }
 0x159   : > { %420 = vrot.lane.b32.xlu0 %v366_v34, %s1053_s6  ;;  %370 = vrot.lane.b32.xlu1 %v366_v34, %s1054_s9 }
 0x15d   : > { %529 = vrot.lane.b32.xlu0 %v368_v36, %s1053_s6  ;;  %468 = vrot.lane.b32.xlu1 %v366_v34, %s1057_s10 }
 0x161   : > { %672 = vrot.lane.b32.xlu0 %v368_v36, %s1057_s10  ;;  %623 = vrot.lane.b32.xlu1 %v368_v36, %s1054_s9 }
 0x165   : > { %721 = vrot.lane.b32.xlu1 %v368_v36, %s1058_s11  ;;  %807 = vrot.lane.b32.xlu0 %v800_v41, %s1053_s6 }
 0x169   : > { %329 = vperm.xlu1 %1040, %v255_v42   ;;  %519 = vperm.xlu0 %1039, %v257_v43  }
 0x16d   : > { %772 = vperm.xlu1 %1040, %v259_v44   ;;  %803 = vperm.xlu0 %1039, %v260_v45  }
 0x1cb   : > { %v371_v46 = vpop.permute.xlu1 %370  ;;  %v421_v47 = vpop.permute.xlu0 %420 }
 0x1cc   : > { %v426_v48 = vsel %vm376_vm12, %v421_v47, 0  ;;  %v378_v49 = vsel %vm376_vm12, %v371_v46, 0 }
 0x1cd   : > { %969 = vmatpush3.bf16.msra.mxu1 %v378_v49  ;;  %975 = vmatpush3.bf16.msra.mxu0 %v426_v48 }
 0x1ce   : > { %980 = vmatprep.subr.bf16.mxu1 %v1055_v22  ;;  %986 = vmatprep.subr.bf16.mxu0 %v1055_v22 }
 0x1cf   : > { %v469_v52 = vpop.permute.xlu1 %468  ;;  %v530_v53 = vpop.permute.xlu0 %529 }
 0x1d0   : > { %v474_v54 = vsel %vm376_vm12, %v469_v52, 0  ;;  %v535_v55 = vsel %vm376_vm12, %v530_v53, 0  ;;  %971 = vmatmul.mubr.msk.bf16.vlgmr.msra.gmra.mxu1 %vm372_vm13, %v248_v50  ;;  %977 = vmatmul.mubr.msk.bf16.vlgmr.msra.gmra.mxu0 %vm372_vm13, %v247_v51 }
 0x1d1   : > { %981 = vmatpush3.bf16.msra.mxu1 %v474_v54  ;;  %987 = vmatpush3.bf16.msra.mxu0 %v535_v55 }
 0x1d2   : > { %982 = vmatprep.mubr.msk.bf16.mxu1 %vm1056_vm8, %v1055_v22  ;;  %992 = vmatprep.subr.bf16.mxu1 %v1055_v22 }
 0x1d3   : > { %988 = vmatprep.mubr.msk.bf16.mxu0 %vm1056_vm8, %v1055_v22  ;;  %998 = vmatprep.subr.bf16.mxu0 %v1055_v22  ;;  %v624_v56 = vpop.permute.xlu1 %623  ;;  %v673_v61 = vpop.permute.xlu0 %672 }
 0x1d4   : > { %v629_v59 = vsel %vm376_vm12, %v624_v56, 0  ;;  %v678_v1 = vsel %vm376_vm12, %v673_v61, 0 }
 0x1d7   : > { %v722_v62 = vpop.permute.xlu1 %721  ;;  %v808_v4 = vpop.permute.xlu0 %807 }
 0x1d8   : > { %983 = vmatmul.mubr.msk.bf16.vlgmr.msra.gmra.mxu1 %vm372_vm13, %v249_v57  ;;  %989 = vmatmul.mubr.msk.bf16.vlgmr.msra.gmra.mxu0 %vm372_vm13, %v251_v58  ;;  %v727_v2 = vsel %vm376_vm12, %v722_v62, 0  ;;  %v813_v9 = vsel %vm276_vm7, %v808_v4, 0 }
 0x1d9   : > { %993 = vmatpush3.bf16.msra.mxu1 %v581_v60  ;;  %999 = vmatpush3.bf16.msra.mxu0 %v629_v59 }
 0x1da   : > { %994 = vmatprep.mubr.msk.bf16.mxu1 %vm1056_vm8, %v1055_v22  ;;  %1000 = vmatprep.mubr.msk.bf16.mxu0 %vm1056_vm8, %v1055_v22 }
 0x1db   : > { %1004 = vmatprep.subr.bf16.mxu1 %v1055_v22  ;;  %1010 = vmatprep.subr.bf16.mxu0 %v1055_v22 }
 0x1e0   : > { %995 = vmatmul.mubr.msk.bf16.vlgmr.msra.gmra.mxu1 %vm372_vm13, %v250_v63  ;;  %1001 = vmatmul.mubr.msk.bf16.vlgmr.msra.gmra.mxu0 %vm372_vm13, %v252_v0 }
 0x1e1   : > { %1005 = vmatpush3.bf16.msra.mxu1 %v678_v1  ;;  %1011 = vmatpush3.bf16.msra.mxu0 %v727_v2 }
 0x1e2   : > { %1006 = vmatprep.mubr.msk.bf16.mxu1 %vm1056_vm8, %v1055_v22  ;;  %1016 = vmatprep.subr.bf16.mxu1 %v1055_v22 }
 0x1e3   : > { %1012 = vmatprep.mubr.msk.bf16.mxu0 %vm1056_vm8, %v1055_v22 }
 0x1e4   : > { %v330_v3 = vpop.permute.xlu1 %329  ;;  %v520_v26 = vpop.permute.xlu0 %519 }
 0x1e5   : > { %v332_v5 = vadd.f32 %v330_v3, %v1129_v21 }
 0x1e7   : > { %vm333_vm14 = vcmp.gt.f32.partialorder %v332_v5, 0.0  ;;  %v334_v8 = vmul.f32 0.02, %v332_v5 }
 0x1e8   : > { %1007 = vmatmul.mubr.msk.bf16.vlgmr.msra.gmra.mxu1 %vm372_vm13, %v253_v6  ;;  %1013 = vmatmul.mubr.msk.bf16.vlgmr.msra.gmra.mxu0 %vm372_vm13, %v254_v7  ;;  %v773_v13 = vpop.permute.xlu1 %772  ;;  %v804_v60 = vpop.permute.xlu0 %803 }
 0x1e9   : > { %1017 = vmatpush3.bf16.msra.mxu1 %v813_v9  ;;  %v335_v10 = vsel %vm333_vm14, %v332_v5, %v334_v8  ;;  %1018 = vmatprep.mubr.msk.bf16.mxu1 %vm1056_vm8, %v1055_v22 }
 0x1ea   : > { %v940_v11 = vpack.c.bf16 %v335_v10, %v335_v10 }
 0x1ec   : > { %340 = vrot.lane.b32.xlu1 %v940_v11, %s1054_s9 }
 0x1f0   : > { %1019 = vmatmul.mubr.msk.bf16.vlgmr.msra.gmra.mxu1 %vm269_vm0, %v246_v12 }
 0x25e   : > { %v341_v14 = vpop.permute.xlu1 %340 }
 0x25f   : > { %344 = vst.msk [vmem:[%s1230_s21] sm:$0xf] %vm343_vm15, %v341_v14 }
 0x290   : > { %v414_v15 = vpop.f32.mrf.mxu1  ;;  %v462_v16 = vpop.f32.mrf.mxu0 }
 0x291   : > { %v463_v23 = vadd.f32 %v462_v16, %v414_v15 }
 0x292   : > { %v972_v17 = vpop.f32.mrf.mxu1  ;;  %v978_v18 = vpop.f32.mrf.mxu0 }
 0x294   : > { %v417_v19 = vpop.f32.mrf.mxu1  ;;  %v465_v20 = vpop.f32.mrf.mxu0 }
 0x296   : > { %v973_v21 = vpop.f32.mrf.mxu1  ;;  %v979_v22 = vpop.f32.mrf.mxu0 }
 0x298   : > { %v510_v24 = vpop.f32.mrf.mxu1  ;;  %v571_v25 = vpop.f32.mrf.mxu0 }
 0x299   : > { %v516_v27 = vadd.f32 %v510_v24, %v463_v23 }
 0x29a   : > { %v984_v28 = vpop.f32.mrf.mxu1  ;;  %v990_v29 = vpop.f32.mrf.mxu0 }
 0x29b   : > { %v522_v30 = vadd.f32 %v520_v26, %v516_v27 }
 0x29c   : > { %v513_v31 = vpop.f32.mrf.mxu1  ;;  %v574_v32 = vpop.f32.mrf.mxu0 }
 0x29d   : > { %vm523_vm0 = vcmp.gt.f32.partialorder %v522_v30, 0.0  ;;  %v524_v33 = vmul.f32 0.02, %v522_v30 }
 0x29e   : > { %v985_v34 = vpop.f32.mrf.mxu1  ;;  %v991_v35 = vpop.f32.mrf.mxu0 }
 0x29f   : > { %v525_v36 = vsel %vm523_vm0, %v522_v30, %v524_v33 }
 0x2a0   : > { %v526_v37 = vpack.c.bf16 %v525_v36, %v525_v36  ;;  %v617_v38 = vpop.f32.mrf.mxu1  ;;  %v665_v39 = vpop.f32.mrf.mxu0 }
 0x2a1   : > { %v618_v42 = vadd.f32 %v617_v38, %v571_v25 }
 0x2a2   : > { %527 = vst.msk [vmem:[%s1230_s21 + $0x4] sm:$0xf] %vm343_vm15, %v526_v37  ;;  %v996_v40 = vpop.f32.mrf.mxu1  ;;  %v1002_v41 = vpop.f32.mrf.mxu0 }
 0x2a3   : > { %v671_v47 = vadd.f32 %v665_v39, %v618_v42 }
 0x2a4   : > { %v620_v43 = vpop.f32.mrf.mxu1  ;;  %v668_v44 = vpop.f32.mrf.mxu0 }
 0x2a6   : > { %v997_v45 = vpop.f32.mrf.mxu1  ;;  %v1003_v46 = vpop.f32.mrf.mxu0 }
 0x2a8   : > { %v714_v48 = vpop.f32.mrf.mxu1  ;;  %v763_v49 = vpop.f32.mrf.mxu0 }
 0x2a9   : > { %v720_v50 = vadd.f32 %v714_v48, %v671_v47 }
 0x2aa   : > { %v1008_v51 = vpop.f32.mrf.mxu1  ;;  %v1014_v52 = vpop.f32.mrf.mxu0 }
 0x2ab   : > { %v769_v53 = vadd.f32 %v763_v49, %v720_v50 }
 0x2ac   : > { %v717_v54 = vpop.f32.mrf.mxu1  ;;  %v766_v55 = vpop.f32.mrf.mxu0 }
 0x2ad   : > { %v775_v56 = vadd.f32 %v773_v13, %v769_v53 }
 0x2ae   : > { %v1009_v57 = vpop.f32.mrf.mxu1  ;;  %v1015_v58 = vpop.f32.mrf.mxu0 }
 0x2af   : > { %vm776_vm1 = vcmp.gt.f32.partialorder %v775_v56, 0.0  ;;  %v777_v59 = vmul.f32 0.02, %v775_v56 }
 0x2b0   : > { %v849_v61 = vpop.f32.mrf.mxu1 }
 0x2b1   : > { %v778_v62 = vsel %vm776_vm1, %v775_v56, %v777_v59  ;;  %v850_v63 = vadd.f32 %v849_v61, %v804_v60 }
 0x2b2   : > { %v779_v0 = vpack.c.bf16 %v778_v62, %v778_v62  ;;  %v1020_v1 = vpop.f32.mrf.mxu1 }
 0x2b3   : > { %vm855_vm2 = vcmp.gt.f32.partialorder %v850_v63, 0.0  ;;  %v856_v2 = vmul.f32 0.02, %v850_v63 }
 0x2b4   : > { %780 = vst.msk [vmem:[%s1230_s21 + $0x8] sm:$0xf] %vm343_vm15, %v779_v0  ;;  %v852_v3 = vpop.f32.mrf.mxu1 }
 0x2b5   : > { %v857_v4 = vsel %vm855_vm2, %v850_v63, %v856_v2 }
 0x2b6   : > { %v858_v5 = vpack.c.bf16 %v857_v4, %v857_v4  ;;  %v1021_v6 = vpop.f32.mrf.mxu1 }
 0x2b8   : > { %859 = vst.msk [vmem:[%s1230_s21 + $0xc] sm:$0xf] %vm343_vm15, %v858_v5 }
 0x2b9 PF: > { %s15_s18 = sadd.s32 1, %s1049_s18  }
 0x2ba   : > { %p12_p4 = scmp.ge.s32.totalorder %s15_s18, 4  }
 0x2bc   :  { %14 = sbr.rel (!%p12_p4) target bundleno = 1 (0x1), region = 70 }

</bundles_post_ra>
